<compile_context>
chip_gen: v5e
topology: v5e:2x2
jax: 0.10.0
libtpu: 0.0.40
codegen_flags: <defaults>
</compile_context>

<pallas_src>
import jax
import jax.numpy as jnp
from jax.experimental import pallas as pl
from jax.experimental.pallas import tpu as pltpu


def lstm_cell_kernel(x_ref, state_ref, wx_ref, wh_ref, b_ref, out_ref):
    H = wh_ref.shape[0]  # hidden size (static)

    x = x_ref[...]                      # [B, input_size]
    h = state_ref[:, :H]                # [B, H]
    c = state_ref[:, H:]                # [B, H]

    # Single fused gate computation: [B, 4H] (= 128 lanes for H=32).
    gates = (jnp.dot(x, wx_ref[...], preferred_element_type=jnp.float32)
             + jnp.dot(h, wh_ref[...], preferred_element_type=jnp.float32)
             + b_ref[...])

    # Static lane slices of the fused gate tensor, order: i | f | o | c~
    i = jax.nn.sigmoid(gates[:, 0:H])
    f = jax.nn.sigmoid(gates[:, H:2 * H])
    o = jax.nn.sigmoid(gates[:, 2 * H:3 * H])
    c_tilde = jnp.tanh(gates[:, 3 * H:4 * H])

    c_new = f * c + i * c_tilde
    h_new = o * jnp.tanh(c_new)

    # Direct slab writes (no output concat / extra temporary).
    out_ref[:, :H] = h_new.astype(out_ref.dtype)
    out_ref[:, H:] = c_new.astype(out_ref.dtype)


def _pack_params(params):
    """Pack per-gate weights/biases into fused [n, 4H] / [1, 4H] operands,
    split at the x/h boundary so the kernel never concatenates on the lane
    axis.  Gate order: i | f | o | c_tilde."""
    w_all = jnp.concatenate(
        [params["weight_i"], params["weight_f"],
         params["weight_o"], params["weight_meminput"]], axis=1)   # [input+H, 4H]
    b_all = jnp.concatenate(
        [params["bias_i"], params["bias_f"],
         params["bias_o"], params["bias_meminput"]], axis=1)       # [1, 4H]
    return w_all, b_all


def lstm_cell(x, state_old, params):
    """Pallas wrapper.  x: [B, input_size], state_old: [B, 2*H] -> [B, 2*H]."""
    B, input_size = x.shape
    H = params["weight_i"].shape[1]

    w_all, b_all = _pack_params(params)
    wx_all = w_all[:input_size]          # [input_size, 4H]
    wh_all = w_all[input_size:]          # [H, 4H]

    vmem = pl.BlockSpec(memory_space=pltpu.MemorySpace.VMEM)
    return pl.pallas_call(
        lstm_cell_kernel,
        out_shape=jax.ShapeDtypeStruct((B, 2 * H), x.dtype),
        in_specs=[vmem] * 5,
        out_specs=vmem,
    )(x, state_old, wx_all, wh_all, b_all)


def init_params(key, hidden_state_size, input_size):
    """Deterministic parameter init matching the PyTorch __init__ shapes."""
    n = input_size + hidden_state_size
    ks = jax.random.split(key, 4)
    scale = 1.0 / jnp.sqrt(jnp.float32(n))

    def w(k):
        return jax.random.normal(k, (n, hidden_state_size), jnp.float32) * scale

    zeros_b = jnp.zeros((1, hidden_state_size), jnp.float32)
    return {
        "weight_f": w(ks[0]), "bias_f": zeros_b,
        "weight_i": w(ks[1]), "bias_i": zeros_b,
        "weight_meminput": w(ks[2]), "bias_meminput": zeros_b,
        "weight_o": w(ks[3]), "bias_o": zeros_b,
    }


def lstm_cell_ref(x, state_old, params):
    """Pure-JAX reference (mirrors the PyTorch forward exactly)."""
    H = params["weight_i"].shape[1]
    h = state_old[:, :H]
    c = state_old[:, H:]
    x2 = jnp.concatenate([x, h], axis=1)
    i = jax.nn.sigmoid(x2 @ params["weight_i"] + params["bias_i"])
    f = jax.nn.sigmoid(x2 @ params["weight_f"] + params["bias_f"])
    o = jax.nn.sigmoid(x2 @ params["weight_o"] + params["bias_o"])
    c_tilde = jnp.tanh(x2 @ params["weight_meminput"] + params["bias_meminput"])
    c = f * c + i * c_tilde
    return jnp.concatenate([o * jnp.tanh(c), c], axis=1)


if __name__ == "__main__":
    batch = 8
    input_size = 16
    hidden = 32

    key = jax.random.PRNGKey(0)
    k_params, k_x, k_state = jax.random.split(key, 3)

    params = init_params(k_params, hidden, input_size)
    x = jax.random.normal(k_x, (batch, input_size), jnp.float32)
    state_old = jax.random.normal(k_state, (batch, 2 * hidden), jnp.float32)

    state_new = lstm_cell(x, state_old, params)
    state_new = jax.block_until_ready(state_new)

    ref = lstm_cell_ref(x, state_old, params)
    assert state_new.shape == (batch, 2 * hidden)
    assert jnp.allclose(state_new, ref, atol=1e-5, rtol=1e-5)

    print("KERNEL_OK")
</pallas_src>

<mosaic_0001>
module attributes {stable_mosaic.version = 11 : i64} {
  func.func @lstm_cell_kernel(%arg0: memref<8x16xf32, #tpu.memory_space<vmem>>, %arg1: memref<8x64xf32, #tpu.memory_space<vmem>>, %arg2: memref<16x128xf32, #tpu.memory_space<vmem>>, %arg3: memref<32x128xf32, #tpu.memory_space<vmem>>, %arg4: memref<1x128xf32, #tpu.memory_space<vmem>>, %arg5: memref<8x64xf32, #tpu.memory_space<vmem>>) attributes {dimension_semantics = [], scalar_prefetch = 0 : i64, scratch_operands = 0 : i64, tpu.core_type = #tpu.core_type<tc>} {
    %c0 = arith.constant 0 : index
    %c0_0 = arith.constant 0 : index
    %0 = vector.load %arg0[%c0, %c0_0] : memref<8x16xf32, #tpu.memory_space<vmem>>, vector<8x16xf32>
    %c0_1 = arith.constant 0 : index
    %c0_2 = arith.constant 0 : index
    %1 = vector.load %arg1[%c0_1, %c0_2] : memref<8x64xf32, #tpu.memory_space<vmem>>, vector<8x32xf32>
    %c0_3 = arith.constant 0 : index
    %c32 = arith.constant 32 : index
    %2 = vector.load %arg1[%c0_3, %c32] : memref<8x64xf32, #tpu.memory_space<vmem>>, vector<8x32xf32>
    %c0_4 = arith.constant 0 : index
    %c0_5 = arith.constant 0 : index
    %3 = vector.load %arg2[%c0_4, %c0_5] : memref<16x128xf32, #tpu.memory_space<vmem>>, vector<16x128xf32>
    %cst = arith.constant dense<0.000000e+00> : vector<8x128xf32>
    %4 = tpu.matmul %0, %3, %cst {dimension_numbers = #tpu.dot_dimension_numbers<[1], [0], [0], [1], [0, 0, 1, 1], [], []>} : vector<8x16xf32>, vector<16x128xf32>, vector<8x128xf32> -> vector<8x128xf32>
    %c0_6 = arith.constant 0 : index
    %c0_7 = arith.constant 0 : index
    %5 = vector.load %arg3[%c0_6, %c0_7] : memref<32x128xf32, #tpu.memory_space<vmem>>, vector<32x128xf32>
    %cst_8 = arith.constant dense<0.000000e+00> : vector<8x128xf32>
    %6 = tpu.matmul %1, %5, %cst_8 {dimension_numbers = #tpu.dot_dimension_numbers<[1], [0], [0], [1], [0, 0, 1, 1], [], []>} : vector<8x32xf32>, vector<32x128xf32>, vector<8x128xf32> -> vector<8x128xf32>
    %7 = arith.addf %4, %6 : vector<8x128xf32>
    %c0_9 = arith.constant 0 : index
    %c0_10 = arith.constant 0 : index
    %8 = vector.load %arg4[%c0_9, %c0_10] : memref<1x128xf32, #tpu.memory_space<vmem>>, vector<1x128xf32>
    %9 = vector.broadcast %8 : vector<1x128xf32> to vector<8x128xf32>
    %10 = arith.addf %7, %9 : vector<8x128xf32>
    %11 = vector.extract_strided_slice %10 {offsets = [0, 0], sizes = [8, 32], strides = [1, 1]} : vector<8x128xf32> to vector<8x32xf32>
    %12 = arith.negf %11 : vector<8x32xf32>
    %13 = math.exp %12 : vector<8x32xf32>
    %cst_11 = arith.constant 1.000000e+00 : f32
    %14 = vector.broadcast %cst_11 : f32 to vector<8x32xf32>
    %15 = arith.addf %14, %13 : vector<8x32xf32>
    %16 = arith.divf %14, %15 : vector<8x32xf32>
    %17 = vector.extract_strided_slice %10 {offsets = [0, 32], sizes = [8, 32], strides = [1, 1]} : vector<8x128xf32> to vector<8x32xf32>
    %18 = arith.negf %17 : vector<8x32xf32>
    %19 = math.exp %18 : vector<8x32xf32>
    %cst_12 = arith.constant 1.000000e+00 : f32
    %20 = vector.broadcast %cst_12 : f32 to vector<8x32xf32>
    %21 = arith.addf %20, %19 : vector<8x32xf32>
    %22 = arith.divf %20, %21 : vector<8x32xf32>
    %23 = vector.extract_strided_slice %10 {offsets = [0, 64], sizes = [8, 32], strides = [1, 1]} : vector<8x128xf32> to vector<8x32xf32>
    %24 = arith.negf %23 : vector<8x32xf32>
    %25 = math.exp %24 : vector<8x32xf32>
    %cst_13 = arith.constant 1.000000e+00 : f32
    %26 = vector.broadcast %cst_13 : f32 to vector<8x32xf32>
    %27 = arith.addf %26, %25 : vector<8x32xf32>
    %28 = arith.divf %26, %27 : vector<8x32xf32>
    %29 = vector.extract_strided_slice %10 {offsets = [0, 96], sizes = [8, 32], strides = [1, 1]} : vector<8x128xf32> to vector<8x32xf32>
    %30 = math.tanh %29 : vector<8x32xf32>
    %31 = arith.mulf %22, %2 : vector<8x32xf32>
    %32 = arith.mulf %16, %30 : vector<8x32xf32>
    %33 = arith.addf %31, %32 : vector<8x32xf32>
    %34 = math.tanh %33 : vector<8x32xf32>
    %35 = arith.mulf %28, %34 : vector<8x32xf32>
    %c0_14 = arith.constant 0 : index
    %c0_15 = arith.constant 0 : index
    %36 = vector.load %arg5[%c0_14, %c0_15] : memref<8x64xf32, #tpu.memory_space<vmem>>, vector<8x32xf32>
    tpu.vector_store %arg5[%c0_14, %c0_15], %35 {strides = array<i32>} : memref<8x64xf32, #tpu.memory_space<vmem>>, vector<8x32xf32>,
    %c0_16 = arith.constant 0 : index
    %c32_17 = arith.constant 32 : index
    %37 = vector.load %arg5[%c0_16, %c32_17] : memref<8x64xf32, #tpu.memory_space<vmem>>, vector<8x32xf32>
    tpu.vector_store %arg5[%c0_16, %c32_17], %33 {strides = array<i32>} : memref<8x64xf32, #tpu.memory_space<vmem>>, vector<8x32xf32>,
    return
  }
}

</mosaic_0001>

<bundles_post_ra>
// kernel: tpu_custom_call.1
= control target key start
LH: loop header
LB: loop body
LE: loop exit
PB: predicated region body
PF: predicated region fallthrough
CT: control target
= control target key end

     0   :  { %10 = vsyncpa [#allocation3], 0  ;;  %s412_s0 = inlined_call_operand.hbm [shape: f32[8,16], index: 0, kind: input, shape index: {}]   ;;  %s413_s1 = inlined_call_operand.hbm [shape: f32[8,64], index: 1, kind: input, shape index: {}]   ;;  %s414_s2 = inlined_call_operand.hbm [shape: f32[16,128], index: 2, kind: input, shape index: {}]   ;;  %s415_s3 = inlined_call_operand.hbm [shape: f32[32,128], index: 3, kind: input, shape index: {}]   ;;  %s416_s4 = inlined_call_operand.vmem [shape: f32[1,128], index: 4, kind: input, shape index: {}]   ;;  %s417_s5 = inlined_call_operand.hbm [shape: f32[8,64], index: 5, kind: output, shape index: {}]  }
   0x1   :  { %11 = vsyncpa [#allocation6], 0 }
   0x2   :  { %12 = vsyncpa [#allocation9], 0  ;;  %s30_s20 = sshll.u32 %s413_s1, 4  ;;  %s31_s20 = int_to_ptr.hbm [resolvable:$true] %s30_s20 }
   0x3   :  { %13 = vsyncpa [#allocation4], 0  ;;  %s353_s21 = smov [#allocation5]   ;;  %s19_s25 = sshll.u32 %s412_s0, 4  ;;  %s20_s25 = int_to_ptr.hbm [resolvable:$true] %s19_s25 }
   0x4   :  { %s32_s22 = sshll.u32 %s353_s21, 4  ;;  %s354_s26 = smov [#allocation2]   ;;  %s33_s22 = int_to_ptr.vmem [resolvable:$true] %s32_s22 }
   0x5   :  { %35 = dma.hbm_to_vmem [thread:$0]  %s31_s20, 128, %s33_s22, [#allocation6]  }
   0x6   :  { %s21_s27 = sshll.u32 %s354_s26, 4  ;;  %s40_s30 = sshll.u32 %s414_s2, 4  ;;  %s22_s27 = int_to_ptr.vmem [resolvable:$true] %s21_s27  ;;  %s41_s30 = int_to_ptr.hbm [resolvable:$true] %s40_s30 }
   0x7   :  { %24 = dma.hbm_to_vmem [thread:$0]  %s20_s25, 128, %s22_s27, [#allocation3]  }
   0x8   :  { %s355_s1 = smov [#allocation7]   ;;  %s53_s9 = sshll.u32 %s415_s3, 4  ;;  %s54_s9 = int_to_ptr.hbm [resolvable:$true] %s53_s9 }
   0x9   :  { %s42_s6 = sshll.u32 %s355_s1, 4  ;;  %s356_s10 = smov 128   ;;  %s43_s6 = int_to_ptr.vmem [resolvable:$true] %s42_s6 }
   0xa   :  { %s357_s0 = smov 8   ;;  %s358_s11 = smov [#allocation8]  }
   0xb   :  { %48 = dma.hbm_to_vmem [thread:$0]  %s41_s30, 256, %s43_s6, [#allocation6], %s356_s10, %s356_s10, %s357_s0  }
   0xc   :  { %s55_s12 = sshll.u32 %s358_s11, 4  ;;  %s56_s12 = int_to_ptr.vmem [resolvable:$true] %s55_s12 }
   0xd   :  { %61 = dma.hbm_to_vmem [thread:$0]  %s54_s9, 512, %s56_s12, [#allocation9], %s356_s10, %s356_s10, %s357_s0  }
   0xe   :  { %345 = dma.done.wait [#allocation3], 128  }
   0xf   :  { %346 = vsyncadd [#allocation3], 4294967168 }
  0x10   :  { %347 = dma.done.wait [#allocation6], 384  }
  0x11   :  { %348 = vsyncadd [#allocation6], 4294966912 }
  0x12   :  { %349 = dma.done.wait [#allocation9], 512  }
  0x13   :  { %350 = vsyncadd [#allocation9], 4294966784  ;;  %v87_v0 = vld [vmem:[#allocation8 + $0x18] sm:$0xff]  ;;  %v86_v1 = vld [vmem:[#allocation8 + $0x10] sm:$0xff]  ;;  %vm112_vm0 = vcmask 130048   ;;  %vm88_vm1 = vcmask 261120  }
  0x14   :  { %104 = vmatpush.msra.mxu0 %v87_v0  ;;  %v83_v2 = vld [vmem:[#allocation7 + $0x8] sm:$0xff]  ;;  %v82_v3 = vld [vmem:[#allocation7] sm:$0xff]  ;;  %v85_v4 = vld [vmem:[#allocation8 + $0x8] sm:$0xff]  ;;  %s359_s13 = smov 32   ;;  %s361_s14 = smov [#allocation10]   ;;  %vm183_vm6 = vcmask 523520  }
  0x15   :  { %130 = vmatpush.msra.mxu1 %v83_v2  ;;  %v80_v5 = vld [vmem:[#allocation2] sm:$0xff]  ;;  %v81_v7 = vld [vmem:[#allocation5] sm:$0xff]  ;;  %s190_s15 = sshll.u32 %s361_s14, 4  ;;  %s192_s18 = sshll.u32 %s417_s5, 4  ;;  %s191_s15 = int_to_ptr.vmem [resolvable:$true] %s190_s15  ;;  %s193_s18 = int_to_ptr.hbm [resolvable:$true] %s192_s18 }
  0x16   :  { %105 = vmatpush.msra.mxu0 %v86_v1  ;;  %v84_v6 = vld [vmem:[#allocation8] sm:$0xff] }
  0x17   :  { %131 = vmatpush.msra.mxu1 %v82_v3  ;;  %v216_v9 = vld [vmem:[%s416_s4] ss:$0 sm:$0xff]  ;;  %s360_s4 = smov 64  }
  0x18   :  { %106 = vmatpush.msra.mxu0 %v85_v4  ;;  %205 = vmatmul.msk.f32.vlgmr.msra.gmra.mxu1 %vm112_vm0, %v80_v5 }
  0x1a   :  { %107 = vmatpush.msra.mxu0 %v84_v6 }
  0x1b   :  { %204 = vmatmul.msk.f32.vlgmr.msra.gmra.mxu0 %vm88_vm1, %v81_v7 }
  0x95   :  { %v133_v8 = vpop.f32.mrf.mxu1 }
  0x98   :  { %v109_v10 = vpop.f32.mrf.mxu0 }
  0x99   :  { %v134_v11 = vadd.f32 %v133_v8, %v109_v10 }
  0x9b   :  { %v140_v12 = vadd.f32 %v216_v9, %v134_v11 }
  0x9d   :  { %217 = vtanh.f32 %v140_v12  ;;  %v206_v14 = vmul.f32 -1.442695, %v140_v12 }
  0x9f   :  { %219 = vpow2.f32 %v206_v14 }
  0xa3   :  { %v218_v13 = vpop.eup %217 }
  0xa4   :  { %163 = vrot.lane.b32.xlu0 %v218_v13, %s359_s13 }
  0xa5   :  { %v220_v15 = vpop.eup %219 }
  0xa6   :  { %v144_v16 = vadd.f32 1.0, %v220_v15 }
  0xa8   :  { %221 = vrcp.f32 %v144_v16  ;;  %v156_v22 = vand.u32 2147483648, %v144_v16  ;;  %vm150_vm3 = vweird.f32 %v144_v16  ;;  %v154_v23 = vand.u32 2147483647, %v144_v16 }
  0xaa   :  { %v157_v25 = vor.u32 1.1754944e-38, %v156_v22  ;;  %vm155_vm5 = vcmp.eq.f32.partialorder %v154_v23, 8.507059e+37 }
  0xae   :  { %v222_v17 = vpop.eup %221 }
  0xaf   :  { %v146_v18 = vmul.f32 %v222_v17, %v144_v16  ;;  %vm151_vm2 = vweird.f32 %v222_v17 }
  0xb0   :  { %vm152_vm4 = vmor %vm150_vm3, %vm151_vm2 }
  0xb1   :  { %v147_v19 = vsub.f32 1.0, %v146_v18 }
  0xb3   :  { %v148_v20 = vmul.f32 %v222_v17, %v147_v19 }
  0xb5   :  { %v149_v21 = vadd.f32 %v222_v17, %v148_v20 }
  0xb7   :  { %v153_v24 = vsel %vm152_vm4, %v222_v17, %v149_v21 }
  0xb8   :  { %v158_v27 = vsel %vm155_vm5, %v157_v25, %v153_v24 }
  0xb9   :  { %v161_v29 = vmul.f32 %v158_v27, %v81_v7 }
 0x116   :  { %v164_v26 = vpop.permute.xlu0 %163 }
 0x117   :  { %v166_v28 = vmul.f32 %v164_v26, %v158_v27 }
 0x119   :  { %168 = vrot.lane.b32.xlu0 %v166_v28, %s359_s13 }
 0x18b   :  { %v169_v30 = vpop.permute.xlu0 %168 }
 0x18c   :  { %v171_v31 = vadd.f32 %v169_v30, %v161_v29 }
 0x18e   :  { %223 = vtanh.f32 %v171_v31 }
 0x194   :  { %v224_v32 = vpop.eup %223 }
 0x195   :  { %174 = vrot.lane.b32.xlu1 %v224_v32, %s359_s13 }
 0x207   :  { %v175_v33 = vpop.permute.xlu1 %174 }
 0x208   :  { %v177_v34 = vmul.f32 %v175_v33, %v158_v27 }
 0x20a   :  { %179 = vrot.lane.b32.xlu1 %v177_v34, %s360_s4 }
 0x27c   :  { %v180_v35 = vpop.permute.xlu1 %179 }
 0x27d   :  { %182 = vst.msk [vmem:[#allocation10] sm:$0xff] %vm88_vm1, %v180_v35 }
 0x27e   :  { %184 = vst.msk [vmem:[#allocation10] sm:$0xff] %vm183_vm6, %v171_v31 }
 0x27f   :  { %195 = dma.vmem_to_hbm [thread:$0]  %s191_s15, 128, %s193_s18, [#allocation4]  }
 0x280   :  { %351 = dma.done.wait [#allocation4], 128  }
 0x281   :  { %352 = vsyncadd [#allocation4], 4294967168 }
 0x282   :  { %200 = vsyncpa [#allocation3], 1 }
 0x283   :  { %201 = vsyncpa [#allocation6], 1 }
 0x284   :  { %202 = vsyncpa [#allocation9], 1 }
 0x285   :  { %203 = vsyncpa [#allocation4], 1 }

</bundles_post_ra>
